<compile_context>
chip_gen: v7x
topology: tpu7x:2x2x1
jax: 0.10.0
libtpu: 0.0.40
codegen_flags: <defaults>
</compile_context>

<pallas_src>
import jax
import jax.numpy as jnp
from jax.experimental import pallas as pl
from jax.experimental.pallas import tpu as pltpu


def _round_up(x, m):
    return ((x + m - 1) // m) * m


def mlp_kernel(x_ref,
               w1_ref, b1_ref,
               w2_ref, b2_ref,
               w3_ref, b3_ref,
               w4_ref, b4_ref,
               o_ref):
    """Whole 4-layer MLP for one batch tile, entirely in VMEM.

    Dots run with bf16 operands on the MXU with f32 accumulation; bias add
    and ReLU stay in f32.
    """
    cd = w1_ref.dtype  # MXU operand compute dtype (bf16)

    h = jnp.dot(x_ref[...], w1_ref[...], preferred_element_type=jnp.float32)
    h = jnp.maximum(h + b1_ref[...], 0.0)

    h = jnp.dot(h.astype(cd), w2_ref[...], preferred_element_type=jnp.float32)
    h = jnp.maximum(h + b2_ref[...], 0.0)

    h = jnp.dot(h.astype(cd), w3_ref[...], preferred_element_type=jnp.float32)
    h = jnp.maximum(h + b3_ref[...], 0.0)

    h = jnp.dot(h.astype(cd), w4_ref[...], preferred_element_type=jnp.float32)
    o_ref[...] = (h + b4_ref[...]).astype(o_ref.dtype)


def mlp_forward(x, params, *, tile_b=None, compute_dtype=jnp.bfloat16):
    """x: (B, input_size) f32. params: dict of w1..w4 (in, out) and b1..b4 (1, out)."""
    B, in_size = x.shape
    out_size = params["w4"].shape[1]
    out_pad = _round_up(out_size, 128)          # lane-dense output stores

    # ---- batch tile choice -------------------------------------------------
    if tile_b is None:
        # Sublane-aligned, capped at 512 rows (fits VMEM easily even at the
        # v7x 32 MiB scoped default), and >= 2 grid steps when B allows so the
        # pipeline overlaps DMA with compute and both v7x TCs get work.
        half = _round_up(max(B // 2, 1), 8)
        tile_b = max(8, min(512, half))
    assert tile_b % 8 == 0, "tile_b must be a multiple of 8 (f32 sublane)"

    b_pad = _round_up(B, tile_b)
    if b_pad != B:
        x = jnp.pad(x, ((0, b_pad - B), (0, 0)))

    # ---- operand preparation (bf16 matmul operands, padded final layer) ----
    x = x.astype(compute_dtype)
    w = [params[f"w{i}"].astype(compute_dtype) for i in (1, 2, 3, 4)]
    b = [params[f"b{i}"].astype(jnp.float32) for i in (1, 2, 3, 4)]
    if out_pad != out_size:
        w[3] = jnp.pad(w[3], ((0, 0), (0, out_pad - out_size)))
        b[3] = jnp.pad(b[3], ((0, 0), (0, out_pad - out_size)))

    grid = (b_pad // tile_b,)

    def const_spec(arr):
        # Full array, same block every grid step -> stays VMEM-resident.
        return pl.BlockSpec(arr.shape, lambda i: (0, 0))

    in_specs = [pl.BlockSpec((tile_b, in_size), lambda i: (i, 0))]
    for arr in (w[0], b[0], w[1], b[1], w[2], b[2], w[3], b[3]):
        in_specs.append(const_spec(arr))
    out_spec = pl.BlockSpec((tile_b, out_pad), lambda i: (i, 0))

    flops = 2 * b_pad * sum(int(wi.shape[0]) * int(wi.shape[1]) for wi in w)
    weight_bytes = sum(int(a.size) * a.dtype.itemsize for a in (w + b))
    bytes_accessed = (int(x.size) * x.dtype.itemsize
                      + b_pad * out_pad * 4
                      + weight_bytes)

    out_padded = pl.pallas_call(
        mlp_kernel,
        out_shape=jax.ShapeDtypeStruct((b_pad, out_pad), jnp.float32),
        grid_spec=pltpu.PrefetchScalarGridSpec(
            num_scalar_prefetch=0,
            grid=grid,
            in_specs=in_specs,
            out_specs=out_spec,
        ),
        compiler_params=pltpu.CompilerParams(
            dimension_semantics=("parallel",)),
        cost_estimate=pl.CostEstimate(
            flops=flops, transcendentals=0, bytes_accessed=bytes_accessed),
    )(x, w[0], b[0], w[1], b[1], w[2], b[2], w[3], b[3])

    return out_padded[:B, :out_size]


def init_params(key, input_size, hidden_size, output_size):
    """Deterministic init mirroring nn.Linear's U(-1/sqrt(fan_in), 1/sqrt(fan_in))."""
    dims = [(input_size, hidden_size),
            (hidden_size, hidden_size * 2),
            (hidden_size * 2, hidden_size * 4),
            (hidden_size * 4, output_size)]
    params = {}
    for idx, (fan_in, fan_out) in enumerate(dims, start=1):
        key, kw, kb = jax.random.split(key, 3)
        bound = 1.0 / jnp.sqrt(fan_in)
        # stored as (in, out): transposed relative to PyTorch's (out, in)
        params[f"w{idx}"] = jax.random.uniform(
            kw, (fan_in, fan_out), jnp.float32, -bound, bound)
        params[f"b{idx}"] = jax.random.uniform(
            kb, (1, fan_out), jnp.float32, -bound, bound)
    return params


def mlp_reference(x, p, compute_dtype=jnp.bfloat16):
    """Pure-JAX reference mimicking the kernel's bf16-operand / f32-accum math."""
    cd = compute_dtype

    def layer(h, w, b, relu):
        y = jnp.dot(h.astype(cd), w.astype(cd),
                    preferred_element_type=jnp.float32) + b
        return jnp.maximum(y, 0.0) if relu else y

    h = layer(x, p["w1"], p["b1"], True)
    h = layer(h, p["w2"], p["b2"], True)
    h = layer(h, p["w3"], p["b3"], True)
    return layer(h, p["w4"], p["b4"], False)


if __name__ == "__main__":
    input_size, hidden_size, output_size = 32, 32, 16

    key = jax.random.PRNGKey(0)
    key, kx = jax.random.split(key)
    params = init_params(key, input_size, hidden_size, output_size)

    # batch=8 matches the original test; batch=50 exercises batch padding and
    # a 2-step pipelined grid.
    for batch in (8, 50):
        kx, sub = jax.random.split(kx)
        x = jax.random.normal(sub, (batch, input_size), jnp.float32)

        out = jax.block_until_ready(mlp_forward(x, params))
        ref = mlp_reference(x, params)

        assert out.shape == (batch, output_size)
        assert jnp.allclose(out, ref, atol=2e-3, rtol=2e-3), \
            f"mismatch vs reference (batch={batch})"

    print("KERNEL_OK")
</pallas_src>

<mosaic_0001>
module attributes {stable_mosaic.version = 11 : i64} {
  func.func @mlp_kernel(%arg0: i32, %arg1: memref<8x32xbf16, #tpu.memory_space<vmem>>, %arg2: memref<32x32xbf16, #tpu.memory_space<vmem>>, %arg3: memref<1x32xf32, #tpu.memory_space<vmem>>, %arg4: memref<32x64xbf16, #tpu.memory_space<vmem>>, %arg5: memref<1x64xf32, #tpu.memory_space<vmem>>, %arg6: memref<64x128xbf16, #tpu.memory_space<vmem>>, %arg7: memref<1x128xf32, #tpu.memory_space<vmem>>, %arg8: memref<128x128xbf16, #tpu.memory_space<vmem>>, %arg9: memref<1x128xf32, #tpu.memory_space<vmem>>, %arg10: memref<8x128xf32, #tpu.memory_space<vmem>>) attributes {dimension_semantics = [#tpu.dimension_semantics<parallel>], iteration_bounds = array<i64: 1>, scalar_prefetch = 0 : i64, scratch_operands = 0 : i64, tpu.core_type = #tpu.core_type<tc>, window_params = [{transform_indices = @transform_0, window_bounds = array<i64: 8, 32>}, {pipeline_mode = #tpu.pipeline_mode<synchronous>, transform_indices = @transform_1, window_bounds = array<i64: 32, 32>}, {pipeline_mode = #tpu.pipeline_mode<synchronous>, transform_indices = @transform_2, window_bounds = array<i64: 1, 32>}, {pipeline_mode = #tpu.pipeline_mode<synchronous>, transform_indices = @transform_3, window_bounds = array<i64: 32, 64>}, {pipeline_mode = #tpu.pipeline_mode<synchronous>, transform_indices = @transform_4, window_bounds = array<i64: 1, 64>}, {pipeline_mode = #tpu.pipeline_mode<synchronous>, transform_indices = @transform_5, window_bounds = array<i64: 64, 128>}, {pipeline_mode = #tpu.pipeline_mode<synchronous>, transform_indices = @transform_6, window_bounds = array<i64: 1, 128>}, {pipeline_mode = #tpu.pipeline_mode<synchronous>, transform_indices = @transform_7, window_bounds = array<i64: 128, 128>}, {pipeline_mode = #tpu.pipeline_mode<synchronous>, transform_indices = @transform_8, window_bounds = array<i64: 1, 128>}, {transform_indices = @transform_9, window_bounds = array<i64: 8, 128>}]} {
    %c0 = arith.constant 0 : index
    %c0_0 = arith.constant 0 : index
    %0 = vector.load %arg1[%c0, %c0_0] : memref<8x32xbf16, #tpu.memory_space<vmem>>, vector<8x32xbf16>
    %c0_1 = arith.constant 0 : index
    %c0_2 = arith.constant 0 : index
    %1 = vector.load %arg2[%c0_1, %c0_2] : memref<32x32xbf16, #tpu.memory_space<vmem>>, vector<32x32xbf16>
    %cst = arith.constant dense<0.000000e+00> : vector<8x32xf32>
    %2 = tpu.matmul %0, %1, %cst {dimension_numbers = #tpu.dot_dimension_numbers<[1], [0], [0], [1], [0, 0, 1, 1], [], []>} : vector<8x32xbf16>, vector<32x32xbf16>, vector<8x32xf32> -> vector<8x32xf32>
    %c0_3 = arith.constant 0 : index
    %c0_4 = arith.constant 0 : index
    %3 = vector.load %arg3[%c0_3, %c0_4] : memref<1x32xf32, #tpu.memory_space<vmem>>, vector<1x32xf32>
    %4 = vector.broadcast %3 : vector<1x32xf32> to vector<8x32xf32>
    %5 = arith.addf %2, %4 : vector<8x32xf32>
    %cst_5 = arith.constant 0.000000e+00 : f32
    %6 = vector.broadcast %cst_5 : f32 to vector<8x32xf32>
    %7 = arith.maximumf %5, %6 : vector<8x32xf32>
    %8 = arith.truncf %7 : vector<8x32xf32> to vector<8x32xbf16>
    %c0_6 = arith.constant 0 : index
    %c0_7 = arith.constant 0 : index
    %9 = vector.load %arg4[%c0_6, %c0_7] : memref<32x64xbf16, #tpu.memory_space<vmem>>, vector<32x64xbf16>
    %cst_8 = arith.constant dense<0.000000e+00> : vector<8x64xf32>
    %10 = tpu.matmul %8, %9, %cst_8 {dimension_numbers = #tpu.dot_dimension_numbers<[1], [0], [0], [1], [0, 0, 1, 1], [], []>} : vector<8x32xbf16>, vector<32x64xbf16>, vector<8x64xf32> -> vector<8x64xf32>
    %c0_9 = arith.constant 0 : index
    %c0_10 = arith.constant 0 : index
    %11 = vector.load %arg5[%c0_9, %c0_10] : memref<1x64xf32, #tpu.memory_space<vmem>>, vector<1x64xf32>
    %12 = vector.broadcast %11 : vector<1x64xf32> to vector<8x64xf32>
    %13 = arith.addf %10, %12 : vector<8x64xf32>
    %cst_11 = arith.constant 0.000000e+00 : f32
    %14 = vector.broadcast %cst_11 : f32 to vector<8x64xf32>
    %15 = arith.maximumf %13, %14 : vector<8x64xf32>
    %16 = arith.truncf %15 : vector<8x64xf32> to vector<8x64xbf16>
    %c0_12 = arith.constant 0 : index
    %c0_13 = arith.constant 0 : index
    %17 = vector.load %arg6[%c0_12, %c0_13] : memref<64x128xbf16, #tpu.memory_space<vmem>>, vector<64x128xbf16>
    %cst_14 = arith.constant dense<0.000000e+00> : vector<8x128xf32>
    %18 = tpu.matmul %16, %17, %cst_14 {dimension_numbers = #tpu.dot_dimension_numbers<[1], [0], [0], [1], [0, 0, 1, 1], [], []>} : vector<8x64xbf16>, vector<64x128xbf16>, vector<8x128xf32> -> vector<8x128xf32>
    %c0_15 = arith.constant 0 : index
    %c0_16 = arith.constant 0 : index
    %19 = vector.load %arg7[%c0_15, %c0_16] : memref<1x128xf32, #tpu.memory_space<vmem>>, vector<1x128xf32>
    %20 = vector.broadcast %19 : vector<1x128xf32> to vector<8x128xf32>
    %21 = arith.addf %18, %20 : vector<8x128xf32>
    %cst_17 = arith.constant 0.000000e+00 : f32
    %22 = vector.broadcast %cst_17 : f32 to vector<8x128xf32>
    %23 = arith.maximumf %21, %22 : vector<8x128xf32>
    %24 = arith.truncf %23 : vector<8x128xf32> to vector<8x128xbf16>
    %c0_18 = arith.constant 0 : index
    %c0_19 = arith.constant 0 : index
    %25 = vector.load %arg8[%c0_18, %c0_19] : memref<128x128xbf16, #tpu.memory_space<vmem>>, vector<128x128xbf16>
    %cst_20 = arith.constant dense<0.000000e+00> : vector<8x128xf32>
    %26 = tpu.matmul %24, %25, %cst_20 {dimension_numbers = #tpu.dot_dimension_numbers<[1], [0], [0], [1], [0, 0, 1, 1], [], []>} : vector<8x128xbf16>, vector<128x128xbf16>, vector<8x128xf32> -> vector<8x128xf32>
    %c0_21 = arith.constant 0 : index
    %c0_22 = arith.constant 0 : index
    %27 = vector.load %arg9[%c0_21, %c0_22] : memref<1x128xf32, #tpu.memory_space<vmem>>, vector<1x128xf32>
    %28 = vector.broadcast %27 : vector<1x128xf32> to vector<8x128xf32>
    %29 = arith.addf %26, %28 : vector<8x128xf32>
    %c0_23 = arith.constant 0 : index
    %c0_24 = arith.constant 0 : index
    %30 = vector.load %arg10[%c0_23, %c0_24] : memref<8x128xf32, #tpu.memory_space<vmem>>, vector<8x128xf32>
    tpu.vector_store %arg10[%c0_23, %c0_24], %29 {strides = array<i32>} : memref<8x128xf32, #tpu.memory_space<vmem>>, vector<8x128xf32>,
    return
  }
  func.func @transform_0(%arg0: i32) -> (i32, i32) {
    %c0_i32 = arith.constant 0 : i32
    %c0_i32_0 = arith.constant 0 : i32
    return %arg0, %c0_i32 : i32, i32
  }
  func.func @transform_1(%arg0: i32) -> (i32, i32) {
    %c0_i32 = arith.constant 0 : i32
    %c0_i32_0 = arith.constant 0 : i32
    %c0_i32_1 = arith.constant 0 : i32
    return %c0_i32, %c0_i32_0 : i32, i32
  }
  func.func @transform_2(%arg0: i32) -> (i32, i32) {
    %c0_i32 = arith.constant 0 : i32
    %c0_i32_0 = arith.constant 0 : i32
    %c0_i32_1 = arith.constant 0 : i32
    return %c0_i32, %c0_i32_0 : i32, i32
  }
  func.func @transform_3(%arg0: i32) -> (i32, i32) {
    %c0_i32 = arith.constant 0 : i32
    %c0_i32_0 = arith.constant 0 : i32
    %c0_i32_1 = arith.constant 0 : i32
    return %c0_i32, %c0_i32_0 : i32, i32
  }
  func.func @transform_4(%arg0: i32) -> (i32, i32) {
    %c0_i32 = arith.constant 0 : i32
    %c0_i32_0 = arith.constant 0 : i32
    %c0_i32_1 = arith.constant 0 : i32
    return %c0_i32, %c0_i32_0 : i32, i32
  }
  func.func @transform_5(%arg0: i32) -> (i32, i32) {
    %c0_i32 = arith.constant 0 : i32
    %c0_i32_0 = arith.constant 0 : i32
    %c0_i32_1 = arith.constant 0 : i32
    return %c0_i32, %c0_i32_0 : i32, i32
  }
  func.func @transform_6(%arg0: i32) -> (i32, i32) {
    %c0_i32 = arith.constant 0 : i32
    %c0_i32_0 = arith.constant 0 : i32
    %c0_i32_1 = arith.constant 0 : i32
    return %c0_i32, %c0_i32_0 : i32, i32
  }
  func.func @transform_7(%arg0: i32) -> (i32, i32) {
    %c0_i32 = arith.constant 0 : i32
    %c0_i32_0 = arith.constant 0 : i32
    %c0_i32_1 = arith.constant 0 : i32
    return %c0_i32, %c0_i32_0 : i32, i32
  }
  func.func @transform_8(%arg0: i32) -> (i32, i32) {
    %c0_i32 = arith.constant 0 : i32
    %c0_i32_0 = arith.constant 0 : i32
    %c0_i32_1 = arith.constant 0 : i32
    return %c0_i32, %c0_i32_0 : i32, i32
  }
  func.func @transform_9(%arg0: i32) -> (i32, i32) {
    %c0_i32 = arith.constant 0 : i32
    %c0_i32_0 = arith.constant 0 : i32
    return %arg0, %c0_i32 : i32, i32
  }
}

</mosaic_0001>

<bundles_post_ra>
// kernel: tpu_custom_call.1
= control target key start
LH: loop header
LB: loop body
LE: loop exit
PB: predicated region body
PF: predicated region fallthrough
CT: control target
= control target key end

     0   :  { %14 = vsyncpa [#allocation3], 0  ;;  %s891_s0 = inlined_call_operand.hbm [shape: bf16[8,32], index: 0, kind: input, shape index: {}]   ;;  %s892_s1 = inlined_call_operand.hbm [shape: bf16[32,32], index: 1, kind: input, shape index: {}]   ;;  %s893_s2 = inlined_call_operand.vmem [shape: f32[1,32], index: 2, kind: input, shape index: {}]   ;;  %s894_s3 = inlined_call_operand.hbm [shape: bf16[32,64], index: 3, kind: input, shape index: {}]   ;;  %s895_s4 = inlined_call_operand.vmem [shape: f32[1,64], index: 4, kind: input, shape index: {}]   ;;  %s896_s5 = inlined_call_operand.hbm [shape: bf16[64,128], index: 5, kind: input, shape index: {}]   ;;  %s897_s6 = inlined_call_operand.vmem [shape: f32[1,128], index: 6, kind: input, shape index: {}]   ;;  %s898_s7 = inlined_call_operand.hbm [shape: bf16[128,128], index: 7, kind: input, shape index: {}]   ;;  %s899_s8 = inlined_call_operand.vmem [shape: f32[1,128], index: 8, kind: input, shape index: {}]   ;;  %s900_s9 = inlined_call_operand.hbm [shape: f32[8,128], index: 9, kind: output, shape index: {}]  }
   0x1   :  { %15 = vsyncpa [#allocation6], 0 }
   0x2   :  { %16 = vsyncpa [#allocation9], 0 }
   0x3   :  { %17 = vsyncpa [#allocation4], 0  ;;  %s709_s30 = smov [#allocation5]   ;;  %s569_s13 = scalar_lea.hbm %s892_s1, 256 }
   0x4   :  { %s33_s10 = sshll.u32 %s709_s30, 4  ;;  %p570_p0 = scmp.ne.s32.totalorder %s892_s1, %s569_s13  ;;  %s34_s10 = int_to_ptr.vmem [resolvable:$true] %s33_s10 }
   0x5   :  { %p573_p1 = scmp.lt.u32.totalorder %s569_s13, %s892_s1 }
   0x7   :  { %p575_p2 = pnand %p573_p1, %p570_p0 }
   0x9   :  { %578 = shalt.err (!%p575_p2)
}
   0xa   :  { %s579_s18 = scalar_lea.vmem %s34_s10, 256  ;;  %p584_p4 = scmp.lt.s32.totalorder %s34_s10, %s34_s10 }
   0xb   :  { %p580_p3 = scmp.ne.s32.totalorder %s34_s10, %s579_s18  ;;  %p585_p5 = scmp.lt.s32.totalorder %s579_s18, %s579_s18 }
   0xd   :  { %p586_p6 = por %p585_p5, %p584_p4 }
   0xf   :  { %p587_p7 = pnand %p586_p6, %p580_p3 }
  0x11   :  { %590 = shalt.err (!%p587_p7)
}
  0x12   :  { %s710_s19 = smov 64   ;;  %s711_s20 = smov 4  }
  0x13   :  { %39 = dma.hbm_to_vmem [thread:$0]  %s892_s1, 256, %s34_s10, [#allocation6], %s710_s19, %s710_s19, %s711_s20  }
  0x14   :  { %s712_s23 = smov [#allocation8]   ;;  %s713_s25 = smov [#allocation2]  }
  0x15   :  { %s61_s24 = sshll.u32 %s712_s23, 4  ;;  %s24_s26 = sshll.u32 %s713_s25, 4  ;;  %s62_s24 = int_to_ptr.vmem [resolvable:$true] %s61_s24  ;;  %s25_s26 = int_to_ptr.vmem [resolvable:$true] %s24_s26 }
  0x16   :  { %s591_s29 = scalar_lea.hbm %s896_s5, 512 }
  0x17   :  { %p592_p8 = scmp.ne.s32.totalorder %s896_s5, %s591_s29  ;;  %p595_p9 = scmp.lt.u32.totalorder %s591_s29, %s896_s5 }
  0x19   :  { %p597_p10 = pnand %p595_p9, %p592_p8 }
  0x1b   :  { %600 = shalt.err (!%p597_p10)
}
  0x1c   :  { %s601_s1 = scalar_lea.vmem %s62_s24, 512  ;;  %p606_p12 = scmp.lt.s32.totalorder %s62_s24, %s62_s24 }
  0x1d   :  { %p602_p11 = scmp.ne.s32.totalorder %s62_s24, %s601_s1  ;;  %p607_p13 = scmp.lt.s32.totalorder %s601_s1, %s601_s1 }
  0x1f   :  { %p608_p0 = por %p607_p13, %p606_p12 }
  0x21   :  { %p609_p1 = pnand %p608_p0, %p602_p11 }
  0x23   :  { %612 = shalt.err (!%p609_p1)
}
  0x24   :  { %67 = dma.hbm_to_vmem [thread:$0]  %s896_s5, 512, %s62_s24, [#allocation9], %s710_s19, %s710_s19, %s711_s20  }
  0x25   :  { %s613_s17 = scalar_lea.hbm %s891_s0, 64 }
  0x26   :  { %p614_p2 = scmp.ne.s32.totalorder %s891_s0, %s613_s17  ;;  %p617_p3 = scmp.lt.u32.totalorder %s613_s17, %s891_s0 }
  0x28   :  { %p619_p4 = pnand %p617_p3, %p614_p2 }
  0x2a   :  { %622 = shalt.err (!%p619_p4)
}
  0x2b   :  { %s623_s25 = scalar_lea.vmem %s25_s26, 64  ;;  %p628_p6 = scmp.lt.s32.totalorder %s25_s26, %s25_s26 }
  0x2c   :  { %p624_p5 = scmp.ne.s32.totalorder %s25_s26, %s623_s25  ;;  %p629_p7 = scmp.lt.s32.totalorder %s623_s25, %s623_s25 }
  0x2e   :  { %p630_p8 = por %p629_p7, %p628_p6 }
  0x30   :  { %p631_p9 = pnand %p630_p8, %p624_p5 }
  0x32   :  { %634 = shalt.err (!%p631_p9)
}
  0x33   :  { %27 = dma.hbm_to_vmem [thread:$0]  %s891_s0, 64, %s25_s26, [#allocation3]  }
  0x34   :  { %s714_s27 = smov [#allocation7]   ;;  %s715_s29 = smov [#allocation10]  }
  0x35   :  { %s47_s28 = sshll.u32 %s714_s27, 4  ;;  %s75_s30 = sshll.u32 %s715_s29, 4  ;;  %s48_s28 = int_to_ptr.vmem [resolvable:$true] %s47_s28  ;;  %s76_s30 = int_to_ptr.vmem [resolvable:$true] %s75_s30 }
  0x36   :  { %s635_s13 = scalar_lea.hbm %s894_s3, 256 }
  0x37   :  { %p636_p10 = scmp.ne.s32.totalorder %s894_s3, %s635_s13  ;;  %p639_p11 = scmp.lt.u32.totalorder %s635_s13, %s894_s3 }
  0x39   :  { %p641_p12 = pnand %p639_p11, %p636_p10 }
  0x3b   :  { %644 = shalt.err (!%p641_p12)
}
  0x3c   :  { %s645_s0 = scalar_lea.vmem %s48_s28, 256  ;;  %p650_p0 = scmp.lt.s32.totalorder %s48_s28, %s48_s28 }
  0x3d   :  { %p646_p13 = scmp.ne.s32.totalorder %s48_s28, %s645_s0  ;;  %p651_p1 = scmp.lt.s32.totalorder %s645_s0, %s645_s0 }
  0x3f   :  { %p652_p2 = por %p651_p1, %p650_p0 }
  0x41   :  { %p653_p3 = pnand %p652_p2, %p646_p13 }
  0x43   :  { %656 = shalt.err (!%p653_p3)
}
  0x44   :  { %53 = dma.hbm_to_vmem [thread:$0]  %s894_s3, 256, %s48_s28, [#allocation6], %s710_s19, %s710_s19, %s711_s20  }
  0x45   :  { %s657_s21 = scalar_lea.hbm %s898_s7, 1024 }
  0x46   :  { %p658_p4 = scmp.ne.s32.totalorder %s898_s7, %s657_s21  ;;  %p661_p5 = scmp.lt.u32.totalorder %s657_s21, %s898_s7 }
  0x48   :  { %p663_p6 = pnand %p661_p5, %p658_p4 }
  0x4a   :  { %666 = shalt.err (!%p663_p6)
}
  0x4b   :  { %s667_s24 = scalar_lea.vmem %s76_s30, 1024  ;;  %p672_p8 = scmp.lt.s32.totalorder %s76_s30, %s76_s30 }
  0x4c   :  { %p668_p7 = scmp.ne.s32.totalorder %s76_s30, %s667_s24  ;;  %p673_p9 = scmp.lt.s32.totalorder %s667_s24, %s667_s24 }
  0x4e   :  { %p674_p10 = por %p673_p9, %p672_p8 }
  0x50   :  { %p675_p11 = pnand %p674_p10, %p668_p7 }
  0x52   :  { %678 = shalt.err (!%p675_p11)
}
  0x53   :  { %81 = dma.hbm_to_vmem [thread:$0]  %s898_s7, 1024, %s76_s30, [#allocation9], %s710_s19, %s710_s19, %s711_s20  }
  0x54   :  { %701 = dma.done.wait [#allocation3], 64  }
  0x55   :  { %702 = vsyncadd [#allocation3], 4294967232 }
  0x56   :  { %703 = dma.done.wait [#allocation6], 512  }
  0x57   :  { %704 = vsyncadd [#allocation6], 4294966784 }
  0x58   :  { %705 = dma.done.wait [#allocation9], 1536  }
  0x59   :  { %706 = vsyncadd [#allocation9], 4294965760  ;;  %v716_v0 = vmov 0.0   ;;  %vm717_vm0 = vmmov 0   ;;  %v553_v1 = vld [vmem:[#allocation5] sm:$0xff]   ;;  %v554_v2 = vld [vmem:[#allocation5 + $0x8] sm:$0xff]  }
  0x5a   :  { %495 = vmatprep.subr.bf16.mxu0 %v716_v0  ;;  %499 = vmatprep.mubr.msk.bf16.mxu0 %vm717_vm0, %v716_v0  ;;  %vm124_vm1 = vcmask 261120   ;;  %v100_v3 = vld [vmem:[#allocation2] sm:$0xf]  ;;  %v555_v4 = vld [vmem:[#allocation7] sm:$0xff]   ;;  %v557_v13 = vld [vmem:[#allocation8] sm:$0xff]   ;;  %vm277_vm2 = vcmask 523264  }
  0x5b   :  { %523 = vmatprep.subr.bf16.mxu1 %v716_v0  ;;  %539 = vmatprep.mubr.msk.bf16.mxu1 %vm717_vm0, %v716_v0  ;;  %v556_v5 = vld [vmem:[#allocation7 + $0x8] sm:$0xff]   ;;  %v558_v15 = vld [vmem:[#allocation8 + $0x8] sm:$0xff]   ;;  %v559_v16 = vld [vmem:[#allocation8 + $0x10] sm:$0xff]   ;;  %s718_s11 = smov [#allocation11]  }
  0x5c   :  { %496 = vmatpush3.bf16.msra.mxu0 %v553_v1  ;;  %v452_v6 = vld [vmem:[%s893_s2] ss:$0 sm:$0xff]  ;;  %v561_v18 = vld [vmem:[#allocation10] sm:$0xff]   ;;  %v562_v19 = vld [vmem:[#allocation10 + $0x8] sm:$0xff]   ;;  %s441_s12 = sshll.u32 %s718_s11, 4  ;;  %s442_s12 = int_to_ptr.vmem [resolvable:$true] %s441_s12 }
  0x5d   :  { %497 = vmatprep.subr.bf16.mxu0 %v716_v0  ;;  %v560_v17 = vld [vmem:[#allocation8 + $0x18] sm:$0xff]   ;;  %524 = vmatpush3.bf16.msra.mxu1 %v561_v18  ;;  %v563_v20 = vld [vmem:[#allocation10 + $0x10] sm:$0xff]   ;;  %v565_v22 = vld [vmem:[#allocation10 + $0x20] sm:$0xff]   ;;  %p684_p13 = scmp.lt.s32.totalorder %s442_s12, %s442_s12 }
  0x5e   :  { %525 = vmatprep.subr.bf16.mxu1 %v716_v0  ;;  %v564_v21 = vld [vmem:[#allocation10 + $0x18] sm:$0xff]   ;;  %v566_v23 = vld [vmem:[#allocation10 + $0x28] sm:$0xff]   ;;  %v567_v32 = vld [vmem:[#allocation10 + $0x30] sm:$0xff]  }
  0x5f   :  { %v456_v24 = vld [vmem:[%s895_s4] ss:$0 sm:$0xff] }
  0x60   :  { %498 = vmatpush3.bf16.msra.mxu0 %v554_v2  ;;  %v568_v33 = vld [vmem:[#allocation10 + $0x38] sm:$0xff]  }
  0x61   :  { %503 = vmatprep.subr.bf16.mxu0 %v716_v0  ;;  %526 = vmatpush3.bf16.msra.mxu1 %v562_v19  ;;  %v460_v34 = vld [vmem:[%s897_s6] ss:$0 sm:$0xff]  ;;  %s679_s6 = scalar_lea.vmem %s442_s12, 128 }
  0x62   :  { %527 = vmatprep.subr.bf16.mxu1 %v716_v0  ;;  %v466_v42 = vld [vmem:[%s899_s8] ss:$0 sm:$0xff]  ;;  %p680_p12 = scmp.ne.s32.totalorder %s442_s12, %s679_s6  ;;  %p685_p0 = scmp.lt.s32.totalorder %s679_s6, %s679_s6 }
  0x63   :  { %500 = vmatmul.mubr.msk.bf16.vlgmr.msra.gmra.mrb[0].mxu0 %vm124_vm1, %v100_v3 }
  0x64   :  { %504 = vmatpush3.bf16.msra.mxu0 %v555_v4  ;;  %507 = vmatprep.mubr.msk.bf16.mxu0 %vm717_vm0, %v716_v0  ;;  %p686_p1 = por %p685_p0, %p684_p13 }
  0x65   :  { %505 = vmatprep.subr.bf16.mxu0 %v716_v0  ;;  %528 = vmatpush3.bf16.msra.mxu1 %v563_v20 }
  0x66   :  { %529 = vmatprep.subr.bf16.mxu1 %v716_v0  ;;  %p687_p2 = pnand %p686_p1, %p680_p12 }
  0x68   :  { %506 = vmatpush3.bf16.msra.mxu0 %v556_v5 }
  0x69   :  { %511 = vmatprep.subr.bf16.mxu0 %v716_v0  ;;  %530 = vmatpush3.bf16.msra.mxu1 %v564_v21 }
  0x6a   :  { %531 = vmatprep.subr.bf16.mxu1 %v716_v0 }
  0x6d   :  { %532 = vmatpush3.bf16.msra.mxu1 %v565_v22 }
  0x6e   :  { %533 = vmatprep.subr.bf16.mxu1 %v716_v0 }
  0x71   :  { %534 = vmatpush3.bf16.msra.mxu1 %v566_v23 }
  0x72   :  { %535 = vmatprep.subr.bf16.mxu1 %v716_v0 }
  0x75   :  { %536 = vmatpush3.bf16.msra.mxu1 %v567_v32 }
  0x76   :  { %537 = vmatprep.subr.bf16.mxu1 %v716_v0 }
  0x79   :  { %538 = vmatpush3.bf16.msra.mxu1 %v568_v33 }
 0x136   :  { %v162_v7 = vpop.f32.mrb[0].mxu0 }
 0x137   :  { %v163_v8 = vadd.f32 %v452_v6, %v162_v7  ;;  %v501_v9 = vpop.f32.mrb[1].mxu0 }
 0x138   :  { %v165_v10 = vpop.f32.mrb[2].mxu0 }
 0x139   :  { %v168_v11 = vmax.f32 %v163_v8, 0.0  ;;  %v502_v12 = vpop.f32.mrb[3].mxu0 }
 0x13b   :  { %v169_v14 = vpack.c.bf16 %v168_v11, %v168_v11 }
 0x13d   :  { %508 = vmatmul.mubr.msk.bf16.vlgmr.msra.gmra.mrb[4].mxu0 %vm124_vm1, %v169_v14 }
 0x13e   :  { %512 = vmatpush3.bf16.msra.mxu0 %v557_v13  ;;  %519 = vmatprep.mubr.msk.bf16.mxu0 %vm717_vm0, %v716_v0 }
 0x13f   :  { %513 = vmatprep.subr.bf16.mxu0 %v716_v0 }
 0x142   :  { %514 = vmatpush3.bf16.msra.mxu0 %v558_v15 }
 0x143   :  { %515 = vmatprep.subr.bf16.mxu0 %v716_v0 }
 0x146   :  { %516 = vmatpush3.bf16.msra.mxu0 %v559_v16 }
 0x147   :  { %517 = vmatprep.subr.bf16.mxu0 %v716_v0 }
 0x14a   :  { %518 = vmatpush3.bf16.msra.mxu0 %v560_v17 }
 0x210   :  { %v230_v25 = vpop.f32.mrb[4].mxu0 }
 0x211   :  { %v231_v26 = vadd.f32 %v456_v24, %v230_v25  ;;  %v509_v27 = vpop.f32.mrb[5].mxu0 }
 0x212   :  { %v233_v28 = vpop.f32.mrb[6].mxu0 }
 0x213   :  { %v236_v29 = vmax.f32 %v231_v26, 0.0  ;;  %v510_v30 = vpop.f32.mrb[7].mxu0 }
 0x215   :  { %v237_v31 = vpack.c.bf16 %v236_v29, %v236_v29 }
 0x217   :  { %520 = vmatmul.mubr.msk.bf16.vlgmr.msra.gmra.mrb[8].mxu0 %vm277_vm2, %v237_v31 }
 0x2ea   :  { %v315_v35 = vpop.f32.mrb[8].mxu0 }
 0x2eb   :  { %v316_v36 = vadd.f32 %v460_v34, %v315_v35  ;;  %v521_v37 = vpop.f32.mrb[9].mxu0 }
 0x2ec   :  { %v318_v38 = vpop.f32.mrb[10].mxu0 }
 0x2ed   :  { %v321_v39 = vmax.f32 %v316_v36, 0.0  ;;  %v522_v40 = vpop.f32.mrb[11].mxu0 }
 0x2ef   :  { %v322_v41 = vpack.c.bf16 %v321_v39, %v321_v39 }
 0x2f1   :  { %540 = vmatmul.mubr.bf16.vlgmr.msra.gmra.mrb[0].mxu1 %v322_v41 }
 0x3c4   :  { %v428_v43 = vpop.f32.mrb[0].mxu1 }
 0x3c5   :  { %v429_v44 = vadd.f32 %v466_v42, %v428_v43  ;;  %v541_v45 = vpop.f32.mrb[1].mxu1 }
 0x3c6   :  { %v431_v46 = vpop.f32.mrb[2].mxu1 }
 0x3c7   :  { %434 = vst [vmem:[#allocation11] sm:$0xff] %v429_v44  ;;  %v542_v47 = vpop.f32.mrb[3].mxu1 }
 0x3c8   :  { %690 = shalt.err (!%p687_p2)
}
 0x3c9   :  { %s691_s8 = scalar_lea.hbm %s900_s9, 128 }
 0x3ca   :  { %p692_p3 = scmp.ne.s32.totalorder %s900_s9, %s691_s8  ;;  %p695_p4 = scmp.lt.u32.totalorder %s691_s8, %s900_s9 }
 0x3cc   :  { %p697_p5 = pnand %p695_p4, %p692_p3 }
 0x3ce   :  { %700 = shalt.err (!%p697_p5)
}
 0x3cf   :  { %444 = dma.vmem_to_hbm [thread:$0]  %s442_s12, 128, %s900_s9, [#allocation4]  }
 0x3d0   :  { %707 = dma.done.wait [#allocation4], 128  }
 0x3d1   :  { %708 = vsyncadd [#allocation4], 4294967168 }
 0x3d2   :  { %448 = vsyncpa [#allocation3], 1 }
 0x3d3   :  { %449 = vsyncpa [#allocation6], 1 }
 0x3d4   :  { %450 = vsyncpa [#allocation9], 1 }
 0x3d5   :  { %451 = vsyncpa [#allocation4], 1 }

</bundles_post_ra>
